<compile_context>
chip_gen: v5e
topology: v5e:2x2
jax: 0.10.0
libtpu: 0.0.40
codegen_flags: <defaults>
</compile_context>

<pallas_src>
import functools

import jax
import jax.numpy as jnp
from jax import lax
from jax.experimental import pallas as pl
from jax.experimental.pallas import tpu as pltpu

LANES = 128
ROW_ALIGN = 32               # safe sublane alignment for int8/bf16/f32 tiles
DEFAULT_BLOCK_ROWS = 8192    # 8192*128*4 B = 4 MiB of f32 scores per DMA step
MAX_INNER_ROWS = 512         # per-chunk compute tile (bounds VMEM temporaries)


def _round_up(v, m):
    return -(-v // m) * m


def _pu_loss_kernel(x_ref, t_ref, acc_ref, *, valid_rows, block_rows,
                    inner_rows, needs_mask):
    """Streaming PU partial-sum reduction.

    acc_ref (VMEM f32[4, inner_rows, 128], kernel *output*, resident across
    the whole grid because its index_map is constant):
      acc[0] += (t == +1)                   -> positive count
      acc[1] += (t == -1)                   -> unlabeled count
      acc[2] += (t == +1) * sigmoid(-x)     -> positive loss mass
      acc[3] += (t == -1) * sigmoid(+x)     -> unlabeled loss mass
    """
    pid = pl.program_id(0)

    @pl.when(pid == 0)
    def _init():
        acc_ref[...] = jnp.zeros_like(acc_ref)

    n_chunks = block_rows // inner_rows

    @pl.loop(0, n_chunks)
    def _(c):
        r0 = pl.multiple_of(c * inner_rows, inner_rows)
        x = x_ref[pl.ds(r0, inner_rows), :].astype(jnp.float32)
        t = t_ref[pl.ds(r0, inner_rows), :]

        pos_b = t == 1
        unl_b = t == -1
        if needs_mask:
            # Rows >= valid_rows belong to the undefined tail of a partial
            # edge block: exclude them and sanitize x (no NaN/Inf leaks).
            row = (pid * block_rows + r0
                   + lax.broadcasted_iota(jnp.int32, (inner_rows, LANES), 0))
            valid = row < valid_rows
            pos_b = jnp.logical_and(valid, pos_b)
            unl_b = jnp.logical_and(valid, unl_b)
            x = jnp.where(valid, x, 0.0)
        pos = pos_b.astype(jnp.float32)
        unl = unl_b.astype(jnp.float32)

        # Single EUP push per element: tanh(x/2) = 2*sigmoid(x) - 1.
        th = jnp.tanh(0.5 * x)
        sig_neg = 0.5 - 0.5 * th    # sigmoid(-x) == loss_func(x)  (y_positive)
        sig_pos = 0.5 + 0.5 * th    # sigmoid(+x) == loss_func(-x) (y_unlabeled)

        # Pure VPU accumulation into the resident output; the cross-lane
        # reduction happens exactly once, in the wrapper.
        acc_ref[0] += pos
        acc_ref[1] += unl
        acc_ref[2] += pos * sig_neg
        acc_ref[3] += unl * sig_pos


def pu_loss(x, t, *, prior=0.3, gamma=1.0, beta=0.0, nnpu=True,
            block_rows=DEFAULT_BLOCK_ROWS):
    """PU-learning loss (forward), matching the PyTorch PULoss module."""
    if not 0.0 < prior < 1.0:
        raise ValueError("The class prior should be in (0, 1)")

    x_flat = jnp.asarray(x).reshape(-1)
    if (not jnp.issubdtype(x_flat.dtype, jnp.floating)) or x_flat.dtype.itemsize > 4:
        x_flat = x_flat.astype(jnp.float32)      # bf16/f16/f32 pass through as-is
    t_flat = jnp.asarray(t).reshape(-1)
    if t_flat.dtype == jnp.bool_ or t_flat.dtype.itemsize > 4:
        t_flat = t_flat.astype(jnp.int32)        # labels read in native dtype otherwise

    n = x_flat.shape[0]
    rem = n % LANES
    if rem:
        # Minimal pad to a whole 128-lane row; padded labels are 0 => neither
        # positive nor unlabeled => contribute nothing.  (Only copy we make.)
        pad = LANES - rem
        x_flat = jnp.pad(x_flat, (0, pad))
        t_flat = jnp.pad(t_flat, (0, pad))
    rows = x_flat.shape[0] // LANES
    x2d = x_flat.reshape(rows, LANES)
    t2d = t_flat.reshape(rows, LANES)

    block_rows = max(ROW_ALIGN, min(int(block_rows), _round_up(rows, ROW_ALIGN)))
    block_rows = _round_up(block_rows, ROW_ALIGN)
    num_blocks = -(-rows // block_rows)
    needs_mask = (rows % block_rows) != 0

    inner_rows = block_rows
    if block_rows > MAX_INNER_ROWS:
        for cand in (512, 256, 128, 64, 32):     # block_rows is a multiple of 32
            if block_rows % cand == 0:
                inner_rows = cand
                break

    kernel = functools.partial(
        _pu_loss_kernel, valid_rows=rows, block_rows=block_rows,
        inner_rows=inner_rows, needs_mask=needs_mask)

    n_elems = rows * LANES
    acc_bytes = 4 * inner_rows * LANES * 4
    partial_sums = pl.pallas_call(
        kernel,
        out_shape=jax.ShapeDtypeStruct((4, inner_rows, LANES), jnp.float32),
        grid=(num_blocks,),
        in_specs=[
            pl.BlockSpec((block_rows, LANES), lambda i: (i, 0)),
            pl.BlockSpec((block_rows, LANES), lambda i: (i, 0)),
        ],
        out_specs=pl.BlockSpec((4, inner_rows, LANES), lambda i: (0, 0, 0)),
        compiler_params=pltpu.CompilerParams(
            dimension_semantics=("arbitrary",),      # streaming reduction axis
            vmem_limit_bytes=32 * 1024 * 1024,        # fits all gens, covers v5e default
        ),
        cost_estimate=pl.CostEstimate(
            flops=14 * n_elems,
            transcendentals=n_elems,
            bytes_accessed=(n_elems * x2d.dtype.itemsize
                            + n_elems * t2d.dtype.itemsize + acc_bytes),
        ),
    )(x2d, t2d)

    sums = jnp.sum(partial_sums, axis=(1, 2))         # (4,): P, U, S_pm, S_up
    p_cnt, u_cnt, s_pm, s_up = sums[0], sums[1], sums[2], sums[3]
    n_pos = jnp.maximum(jnp.float32(1.0), p_cnt)
    n_unl = jnp.maximum(jnp.float32(1.0), u_cnt)
    positive_risk = prior * s_pm / n_pos
    # sum(pos * sigmoid(x)) = P - sum(pos * sigmoid(-x))
    negative_risk = s_up / n_unl - prior * (p_cnt - s_pm) / n_pos
    objective = positive_risk + negative_risk

    if nnpu:
        # PyTorch: if negative_risk.item() < -beta: return -gamma * negative_risk
        #          else:                             return objective
        return jnp.where(negative_risk < -beta, -gamma * negative_risk, objective)
    return objective


def _pu_loss_ref(x, t, *, prior=0.3, gamma=1.0, beta=0.0, nnpu=True):
    """Plain-JAX reference mirroring the PyTorch forward (correctness check)."""
    x = jnp.asarray(x).reshape(-1).astype(jnp.float32)
    t = jnp.asarray(t).reshape(-1)
    pos = (t == 1).astype(jnp.float32)
    unl = (t == -1).astype(jnp.float32)
    n_pos = jnp.maximum(1.0, pos.sum())
    n_unl = jnp.maximum(1.0, unl.sum())
    y_pos = jax.nn.sigmoid(-x)   # loss_func(x)
    y_unl = jax.nn.sigmoid(x)    # loss_func(-x)
    positive_risk = (prior * pos / n_pos * y_pos).sum()
    negative_risk = ((unl / n_unl - prior * pos / n_pos) * y_unl).sum()
    objective = positive_risk + negative_risk
    if nnpu:
        return jnp.where(negative_risk < -beta, -gamma * negative_risk, objective)
    return objective


if __name__ == "__main__":
    key = jax.random.PRNGKey(0)
    kx1, kt1, kx2, kt2 = jax.random.split(key, 4)

    # Case 1: small (2, 128) batch of scores with +1 / -1 labels
    # -> single partial block, tail-row mask path.
    x1 = jax.random.normal(kx1, (2, 128), dtype=jnp.float32)
    t1 = jnp.where(jax.random.uniform(kt1, (2, 128)) < 0.3, 1, -1).astype(jnp.int32)

    out1 = jax.block_until_ready(pu_loss(x1, t1, prior=0.3, gamma=1.0, beta=0.0, nnpu=True))
    ref1 = _pu_loss_ref(x1, t1, prior=0.3, gamma=1.0, beta=0.0, nnpu=True)
    assert jnp.allclose(out1, ref1, atol=1e-5, rtol=1e-4), (out1, ref1)

    out1b = jax.block_until_ready(pu_loss(x1, t1, prior=0.3, nnpu=False))
    ref1b = _pu_loss_ref(x1, t1, prior=0.3, nnpu=False)
    assert jnp.allclose(out1b, ref1b, atol=1e-5, rtol=1e-4), (out1b, ref1b)

    # Case 2: ragged size + tiny block_rows -> multi-step pipelined grid
    # exercising init/accumulate, the inner chunk loop, element padding and
    # the partial-edge-block row mask.
    N2 = 96 * 128 + 17
    x2 = jax.random.normal(kx2, (N2,), dtype=jnp.float32)
    t2 = jnp.where(jax.random.uniform(kt2, (N2,)) < 0.3, 1, -1).astype(jnp.int32)

    out2 = jax.block_until_ready(pu_loss(x2, t2, prior=0.3, block_rows=64))
    ref2 = _pu_loss_ref(x2, t2, prior=0.3)
    assert jnp.allclose(out2, ref2, atol=1e-5, rtol=1e-4), (out2, ref2)

    print("KERNEL_OK")
</pallas_src>

<mosaic_0001>
module attributes {stable_mosaic.version = 11 : i64} {
  func.func @_pu_loss_kernel(%arg0: i32, %arg1: memref<32x128xf32, #tpu.memory_space<vmem>>, %arg2: memref<32x128xi32, #tpu.memory_space<vmem>>, %arg3: memref<4x32x128xf32, #tpu.memory_space<vmem>>) attributes {dimension_semantics = [#tpu.dimension_semantics<arbitrary>], iteration_bounds = array<i64: 1>, scalar_prefetch = 0 : i64, scratch_operands = 0 : i64, tpu.core_type = #tpu.core_type<tc>, window_params = [{transform_indices = @transform_0, window_bounds = array<i64: 32, 128>}, {transform_indices = @transform_1, window_bounds = array<i64: 32, 128>}, {pipeline_mode = #tpu.pipeline_mode<synchronous>, transform_indices = @transform_2, window_bounds = array<i64: 4, 32, 128>}]} {
    %c0_i32 = arith.constant 0 : i32
    %0 = arith.cmpi eq, %arg0, %c0_i32 : i32
    %1 = arith.extui %0 : i1 to i32
    %c0_i32_0 = arith.constant 0 : i32
    %2 = arith.cmpi ne, %1, %c0_i32_0 : i32
    scf.if %2 {
      %cst_33 = arith.constant 0.000000e+00 : f32
      %67 = vector.broadcast %cst_33 : f32 to vector<4x32x128xf32>
      %c0_34 = arith.constant 0 : index
      %c0_35 = arith.constant 0 : index
      %c0_36 = arith.constant 0 : index
      %68 = vector.load %arg3[%c0_34, %c0_35, %c0_36] : memref<4x32x128xf32, #tpu.memory_space<vmem>>, vector<4x32x128xf32>
      tpu.vector_store %arg3[%c0_34, %c0_35, %c0_36], %67 {strides = array<i32>} : memref<4x32x128xf32, #tpu.memory_space<vmem>>, vector<4x32x128xf32>,
    } else {
    }
    %c0_i32_1 = arith.constant 0 : i32
    %c1_i32 = arith.constant 1 : i32
    %3 = arith.muli %c0_i32_1, %c1_i32 : i32
    %c0_i32_2 = arith.constant 0 : i32
    %4 = arith.addi %c0_i32_2, %3 : i32
    %c32_i32 = arith.constant 32 : i32
    %5 = arith.muli %4, %c32_i32 : i32
    %6 = tpu.assume_multiple %5, 32 : i32
    %7 = arith.index_cast %6 : i32 to index
    %c0 = arith.constant 0 : index
    %8 = vector.load %arg1[%7, %c0] : memref<32x128xf32, #tpu.memory_space<vmem>>, vector<32x128xf32>
    %9 = arith.index_cast %6 : i32 to index
    %c0_3 = arith.constant 0 : index
    %10 = vector.load %arg2[%9, %c0_3] : memref<32x128xi32, #tpu.memory_space<vmem>>, vector<32x128xi32>
    %c1_i32_4 = arith.constant 1 : i32
    %11 = vector.broadcast %c1_i32_4 : i32 to vector<32x128xi32>
    %12 = arith.cmpi eq, %10, %11 : vector<32x128xi32>
    %c-1_i32 = arith.constant -1 : i32
    %13 = vector.broadcast %c-1_i32 : i32 to vector<32x128xi32>
    %14 = arith.cmpi eq, %10, %13 : vector<32x128xi32>
    %c32_i32_5 = arith.constant 32 : i32
    %15 = arith.muli %arg0, %c32_i32_5 : i32
    %16 = arith.addi %15, %6 : i32
    %17 = tpu.iota {dimensions = array<i32: 0>} : vector<32x128xi32>
    %18 = vector.broadcast %16 : i32 to vector<32x128xi32>
    %19 = arith.addi %18, %17 : vector<32x128xi32>
    %c2_i32 = arith.constant 2 : i32
    %20 = vector.broadcast %c2_i32 : i32 to vector<32x128xi32>
    %21 = arith.cmpi slt, %19, %20 : vector<32x128xi32>
    %22 = arith.andi %21, %12 : vector<32x128xi1>
    %23 = arith.andi %21, %14 : vector<32x128xi1>
    %cst = arith.constant 0.000000e+00 : f32
    %24 = vector.broadcast %cst : f32 to vector<32x128xf32>
    %25 = arith.select %21, %8, %24 : vector<32x128xi1>, vector<32x128xf32>
    %26 = arith.extui %22 : vector<32x128xi1> to vector<32x128xi32>
    %27 = arith.sitofp %26 : vector<32x128xi32> to vector<32x128xf32>
    %28 = arith.extui %23 : vector<32x128xi1> to vector<32x128xi32>
    %29 = arith.sitofp %28 : vector<32x128xi32> to vector<32x128xf32>
    %cst_6 = arith.constant 5.000000e-01 : f32
    %30 = vector.broadcast %cst_6 : f32 to vector<32x128xf32>
    %31 = arith.mulf %30, %25 : vector<32x128xf32>
    %32 = math.tanh %31 : vector<32x128xf32>
    %cst_7 = arith.constant 5.000000e-01 : f32
    %33 = vector.broadcast %cst_7 : f32 to vector<32x128xf32>
    %34 = arith.mulf %33, %32 : vector<32x128xf32>
    %cst_8 = arith.constant 5.000000e-01 : f32
    %35 = vector.broadcast %cst_8 : f32 to vector<32x128xf32>
    %36 = arith.subf %35, %34 : vector<32x128xf32>
    %cst_9 = arith.constant 5.000000e-01 : f32
    %37 = vector.broadcast %cst_9 : f32 to vector<32x128xf32>
    %38 = arith.mulf %37, %32 : vector<32x128xf32>
    %cst_10 = arith.constant 5.000000e-01 : f32
    %39 = vector.broadcast %cst_10 : f32 to vector<32x128xf32>
    %40 = arith.addf %39, %38 : vector<32x128xf32>
    %c0_11 = arith.constant 0 : index
    %c0_12 = arith.constant 0 : index
    %c0_13 = arith.constant 0 : index
    %41 = vector.load %arg3[%c0_11, %c0_12, %c0_13] : memref<4x32x128xf32, #tpu.memory_space<vmem>>, vector<1x32x128xf32>
    %42 = vector.shape_cast %41 : vector<1x32x128xf32> to vector<32x128xf32>
    %43 = arith.addf %42, %27 : vector<32x128xf32>
    %c0_14 = arith.constant 0 : index
    %c0_15 = arith.constant 0 : index
    %c0_16 = arith.constant 0 : index
    %44 = vector.load %arg3[%c0_14, %c0_15, %c0_16] : memref<4x32x128xf32, #tpu.memory_space<vmem>>, vector<1x32x128xf32>
    %45 = vector.shape_cast %44 : vector<1x32x128xf32> to vector<32x128xf32>
    %46 = vector.shape_cast %43 : vector<32x128xf32> to vector<1x32x128xf32>
    tpu.vector_store %arg3[%c0_14, %c0_15, %c0_16], %46 {strides = array<i32>} : memref<4x32x128xf32, #tpu.memory_space<vmem>>, vector<1x32x128xf32>,
    %c1 = arith.constant 1 : index
    %c0_17 = arith.constant 0 : index
    %c0_18 = arith.constant 0 : index
    %47 = vector.load %arg3[%c1, %c0_17, %c0_18] : memref<4x32x128xf32, #tpu.memory_space<vmem>>, vector<1x32x128xf32>
    %48 = vector.shape_cast %47 : vector<1x32x128xf32> to vector<32x128xf32>
    %49 = arith.addf %48, %29 : vector<32x128xf32>
    %c1_19 = arith.constant 1 : index
    %c0_20 = arith.constant 0 : index
    %c0_21 = arith.constant 0 : index
    %50 = vector.load %arg3[%c1_19, %c0_20, %c0_21] : memref<4x32x128xf32, #tpu.memory_space<vmem>>, vector<1x32x128xf32>
    %51 = vector.shape_cast %50 : vector<1x32x128xf32> to vector<32x128xf32>
    %52 = vector.shape_cast %49 : vector<32x128xf32> to vector<1x32x128xf32>
    tpu.vector_store %arg3[%c1_19, %c0_20, %c0_21], %52 {strides = array<i32>} : memref<4x32x128xf32, #tpu.memory_space<vmem>>, vector<1x32x128xf32>,
    %c2 = arith.constant 2 : index
    %c0_22 = arith.constant 0 : index
    %c0_23 = arith.constant 0 : index
    %53 = vector.load %arg3[%c2, %c0_22, %c0_23] : memref<4x32x128xf32, #tpu.memory_space<vmem>>, vector<1x32x128xf32>
    %54 = vector.shape_cast %53 : vector<1x32x128xf32> to vector<32x128xf32>
    %55 = arith.mulf %27, %36 : vector<32x128xf32>
    %56 = arith.addf %54, %55 : vector<32x128xf32>
    %c2_24 = arith.constant 2 : index
    %c0_25 = arith.constant 0 : index
    %c0_26 = arith.constant 0 : index
    %57 = vector.load %arg3[%c2_24, %c0_25, %c0_26] : memref<4x32x128xf32, #tpu.memory_space<vmem>>, vector<1x32x128xf32>
    %58 = vector.shape_cast %57 : vector<1x32x128xf32> to vector<32x128xf32>
    %59 = vector.shape_cast %56 : vector<32x128xf32> to vector<1x32x128xf32>
    tpu.vector_store %arg3[%c2_24, %c0_25, %c0_26], %59 {strides = array<i32>} : memref<4x32x128xf32, #tpu.memory_space<vmem>>, vector<1x32x128xf32>,
    %c3 = arith.constant 3 : index
    %c0_27 = arith.constant 0 : index
    %c0_28 = arith.constant 0 : index
    %60 = vector.load %arg3[%c3, %c0_27, %c0_28] : memref<4x32x128xf32, #tpu.memory_space<vmem>>, vector<1x32x128xf32>
    %61 = vector.shape_cast %60 : vector<1x32x128xf32> to vector<32x128xf32>
    %62 = arith.mulf %29, %40 : vector<32x128xf32>
    %63 = arith.addf %61, %62 : vector<32x128xf32>
    %c3_29 = arith.constant 3 : index
    %c0_30 = arith.constant 0 : index
    %c0_31 = arith.constant 0 : index
    %64 = vector.load %arg3[%c3_29, %c0_30, %c0_31] : memref<4x32x128xf32, #tpu.memory_space<vmem>>, vector<1x32x128xf32>
    %65 = vector.shape_cast %64 : vector<1x32x128xf32> to vector<32x128xf32>
    %66 = vector.shape_cast %63 : vector<32x128xf32> to vector<1x32x128xf32>
    tpu.vector_store %arg3[%c3_29, %c0_30, %c0_31], %66 {strides = array<i32>} : memref<4x32x128xf32, #tpu.memory_space<vmem>>, vector<1x32x128xf32>,
    %c1_i32_32 = arith.constant 1 : i32
    return
  }
  func.func @transform_0(%arg0: i32) -> (i32, i32) {
    %c0_i32 = arith.constant 0 : i32
    %c0_i32_0 = arith.constant 0 : i32
    return %arg0, %c0_i32 : i32, i32
  }
  func.func @transform_1(%arg0: i32) -> (i32, i32) {
    %c0_i32 = arith.constant 0 : i32
    %c0_i32_0 = arith.constant 0 : i32
    return %arg0, %c0_i32 : i32, i32
  }
  func.func @transform_2(%arg0: i32) -> (i32, i32, i32) {
    %c0_i32 = arith.constant 0 : i32
    %c0_i32_0 = arith.constant 0 : i32
    %c0_i32_1 = arith.constant 0 : i32
    %c0_i32_2 = arith.constant 0 : i32
    return %c0_i32, %c0_i32_0, %c0_i32_1 : i32, i32, i32
  }
}

</mosaic_0001>

<bundles_post_ra>
// kernel: tpu_custom_call.1
= control target key start
LH: loop header
LB: loop body
LE: loop exit
PB: predicated region body
PF: predicated region fallthrough
CT: control target
= control target key end

     0   :  { %7 = vsyncpa [#allocation3], 0  ;;  %s347_s0 = inlined_call_operand.hbm [shape: f32[2,128], index: 0, kind: input, shape index: {}]   ;;  %s348_s1 = inlined_call_operand.hbm [shape: s32[2,128], index: 1, kind: input, shape index: {}]   ;;  %s349_s2 = inlined_call_operand.hbm [shape: f32[4,32,128], index: 2, kind: output, shape index: {}]  }
   0x1   :  { %8 = vsyncpa [#allocation6], 0 }
   0x2   :  { %9 = vsyncpa [#allocation4], 0 }
   0x3   :  { %13 = vsyncadd [#allocation3], 480  ;;  %s14_s11 = sshll.u32 %s347_s0, 4  ;;  %s315_s12 = smov [#allocation2]   ;;  %s15_s11 = int_to_ptr.hbm [resolvable:$true] %s14_s11 }
   0x4   :  { %s16_s13 = sshll.u32 %s315_s12, 4  ;;  %s316_s14 = smov 32   ;;  %s17_s13 = int_to_ptr.vmem [resolvable:$true] %s16_s13 }
   0x5   :  { %s317_s15 = smov 2  }
   0x6   :  { %22 = dma.hbm_to_vmem [thread:$0]  %s15_s11, 32, %s17_s13, [#allocation3], %s316_s14, %s316_s14, %s317_s15  }
   0x7   :  { %26 = vsyncadd [#allocation6], 480  ;;  %s27_s18 = sshll.u32 %s348_s1, 4  ;;  %s318_s19 = smov [#allocation5]   ;;  %s28_s18 = int_to_ptr.hbm [resolvable:$true] %s27_s18 }
   0x8   :  { %s29_s20 = sshll.u32 %s318_s19, 4  ;;  %s30_s20 = int_to_ptr.vmem [resolvable:$true] %s29_s20 }
   0x9   :  { %35 = dma.hbm_to_vmem [thread:$0]  %s28_s18, 32, %s30_s20, [#allocation6], %s316_s14, %s316_s14, %s317_s15  }
   0xa   :  { %309 = dma.done.wait [#allocation3], 512  }
   0xb   :  { %310 = vsyncadd [#allocation3], 4294966784 }
   0xc   :  { %311 = dma.done.wait [#allocation6], 512  }
   0xd   :  { %312 = vsyncadd [#allocation6], 4294966784  ;;  %v82_v0 = vlaneseq  ;;  %v319_v1 = vmov 0.0   ;;  %v64_v4 = vld [vmem:[#allocation2] sm:$0xff]  ;;  %s320_s0 = smov [#allocation7]   ;;  %s209_s23 = sshll.u32 %s349_s2, 4  ;;  %s210_s23 = int_to_ptr.hbm [resolvable:$true] %s209_s23 }
   0xe   :  { %153 = vst [vmem:[#allocation7 + $0x8] sm:$0xff] %v319_v1  ;;  %233 = vtanh.f32 %v319_v1  ;;  %v68_v5 = vld [vmem:[#allocation5] sm:$0xff]  ;;  %s207_s1 = sshll.u32 %s320_s0, 4  ;;  %s321_s24 = smov 128   ;;  %s208_s1 = int_to_ptr.vmem [resolvable:$true] %s207_s1 }
   0xf   :  { %v83_v2 = vshrl.u32 %v82_v0, 7  ;;  %154 = vst [vmem:[#allocation7 + $0x10] sm:$0xff] %v319_v1  ;;  %vm72_vm1 = vcmp.eq.s32.totalorder %v68_v5, 1  ;;  %vm76_vm2 = vcmp.eq.s32.totalorder %v68_v5, 4294967295  ;;  %s322_s25 = smov 8  }
  0x10   :  { %155 = vst [vmem:[#allocation7 + $0x18] sm:$0xff] %v319_v1 }
  0x11   :  { %166 = vst [vmem:[#allocation7 + $0x28] sm:$0xff] %v319_v1  ;;  %vm92_vm0 = vcmp.lt.s32.totalorder %v83_v2, 2 }
  0x12   :  { %167 = vst [vmem:[#allocation7 + $0x30] sm:$0xff] %v319_v1  ;;  %v104_v6 = vsel %vm92_vm0, %v64_v4, 0.0  ;;  %vm96_vm3 = vmand %vm92_vm0, %vm72_vm1 }
  0x13   :  { %168 = vst [vmem:[#allocation7 + $0x38] sm:$0xff] %v319_v1  ;;  %v124_v8 = vmul.f32 0.5, %v104_v6  ;;  %v223_v9 = vsel %vm96_vm3, 1.0, %v319_v1  ;;  %vm100_vm4 = vmand %vm92_vm0, %vm76_vm2 }
  0x14   :  { %v234_v3 = vpop.eup %233  ;;  %v224_v12 = vsel %vm100_vm4, 1.0, %v319_v1  ;;  %152 = vst [vmem:[#allocation7] sm:$0xff] %v223_v9 }
  0x15   :  { %v133_v7 = vmul.f32 0.5, %v234_v3  ;;  %235 = vtanh.f32 %v124_v8  ;;  %165 = vst [vmem:[#allocation7 + $0x20] sm:$0xff] %v224_v12 }
  0x17   :  { %v137_v10 = vsub.f32 0.5, %v133_v7  ;;  %v141_v11 = vadd.f32 0.5, %v133_v7 }
  0x19   :  { %v175_v13 = vmul.f32 0.0, %v137_v10  ;;  %v192_v14 = vmul.f32 0.0, %v141_v11 }
  0x1b   :  { %183 = vst [vmem:[#allocation7 + $0x48] sm:$0xff] %v175_v13  ;;  %v236_v15 = vpop.eup %235 }
  0x1c   :  { %184 = vst [vmem:[#allocation7 + $0x50] sm:$0xff] %v175_v13  ;;  %v132_v16 = vmul.f32 0.5, %v236_v15 }
  0x1d   :  { %185 = vst [vmem:[#allocation7 + $0x58] sm:$0xff] %v175_v13 }
  0x1e   :  { %200 = vst [vmem:[#allocation7 + $0x68] sm:$0xff] %v192_v14  ;;  %v136_v17 = vsub.f32 0.5, %v132_v16  ;;  %v140_v18 = vadd.f32 0.5, %v132_v16 }
  0x1f   :  { %201 = vst [vmem:[#allocation7 + $0x70] sm:$0xff] %v192_v14 }
  0x20   :  { %202 = vst [vmem:[#allocation7 + $0x78] sm:$0xff] %v192_v14  ;;  %v174_v19 = vmul.f32 %v223_v9, %v136_v17  ;;  %v191_v20 = vmul.f32 %v224_v12, %v140_v18 }
  0x22   :  { %182 = vst [vmem:[#allocation7 + $0x40] sm:$0xff] %v174_v19 }
  0x23   :  { %199 = vst [vmem:[#allocation7 + $0x60] sm:$0xff] %v191_v20 }
  0x24   :  { %215 = dma.vmem_to_hbm [thread:$0]  %s208_s1, 2048, %s210_s23, [#allocation4], %s321_s24, %s321_s24, %s322_s25  }
  0x25   :  { %313 = dma.done.wait [#allocation4], 2048  }
  0x26   :  { %314 = vsyncadd [#allocation4], 4294965248 }
  0x27   :  { %220 = vsyncpa [#allocation3], 1 }
  0x28   :  { %221 = vsyncpa [#allocation6], 1 }
  0x29   :  { %222 = vsyncpa [#allocation4], 1 }

</bundles_post_ra>
